<compile_context>
chip_gen: v6e
topology: v6e:2x2x1
jax: 0.10.0
libtpu: 0.0.40
codegen_flags: <defaults>
</compile_context>

<pallas_src>
import jax
import jax.numpy as jnp
from jax import lax
from jax.experimental import pallas as pl
from jax.experimental.pallas import tpu as pltpu

NUM_BOND_TYPE = 6
NUM_BOND_DIRECTION = 3
NUM_ATOM_TYPE = 120
NUM_CHIRALITY_TAG = 3
BN_EPS = 1e-5
OUT_LANES = 128  # lane-dense output width (sliced to 2 in the wrapper)


def advmask_kernel(h0_ref, A_ref, eb_ref, W1_ref, b1_ref, W2_ref, b2_ref,
                   gamma_ref, beta_ref, wdiff_ref, sbias_ref, z_ref):
    N = h0_ref.shape[0]
    num_layer = eb_ref.shape[0]

    A = A_ref[...]                      # (N, N) bf16 — fed straight to the MXU
    h = h0_ref[...]                     # (N, emb) bf16 initial node embeddings
    ones_n = jnp.ones((1, N), jnp.float32)   # hoisted: MXU column-sum row
    inv_n = 1.0 / N

    for l in range(num_layer):          # static unrolled layer loop
        # GINConv aggregation: sum over in-edges of (h_src + edge_emb), dense.
        agg = (jnp.dot(A, h.astype(jnp.bfloat16),
                       preferred_element_type=jnp.float32)
               + eb_ref[l])             # bf16 bias promotes to f32
        # GIN MLP: Linear -> ReLU -> Linear (bf16 operands, f32 accumulate)
        h1 = jnp.maximum(
            jnp.dot(agg.astype(jnp.bfloat16), W1_ref[l],
                    preferred_element_type=jnp.float32) + b1_ref[l], 0.0)
        h2 = (jnp.dot(h1.astype(jnp.bfloat16), W2_ref[l],
                      preferred_element_type=jnp.float32) + b2_ref[l])
        # BatchNorm1d, training-mode batch statistics (biased variance).
        # Two-pass centered moments; column sums on the MXU (keeps XLU free).
        mu = jnp.dot(ones_n, h2, preferred_element_type=jnp.float32) * inv_n
        d = h2 - mu
        var = jnp.dot(ones_n, d * d, preferred_element_type=jnp.float32) * inv_n
        h = d * lax.rsqrt(var + BN_EPS) * gamma_ref[l] + beta_ref[l]
        if l < num_layer - 1:
            h = jnp.maximum(h, 0.0)
        # dropout_ratio = 0 in this config -> identity

    # fc head + hard gumbel-softmax for a 2-way head == sign test on the
    # logit difference (one tiny MXU dot, no width-2 strided output).
    s = (jnp.dot(h, wdiff_ref[...], preferred_element_type=jnp.float32)
         + sbias_ref[...])                                   # (N, 1)
    pick0 = (s >= 0.0).astype(jnp.float32)                   # (N, 1)
    col = lax.broadcasted_iota(jnp.int32, z_ref.shape, 1)    # (N, 128)
    z_ref[...] = jnp.where(col == 0, pick0,
                           jnp.where(col == 1, 1.0 - pick0, 0.0)
                           ).astype(z_ref.dtype)


def init_params(key, num_layer, emb_dim):
    ks = jax.random.split(key, 8)

    def xavier(k, shape):
        a = (6.0 / (shape[-2] + shape[-1])) ** 0.5
        return jax.random.uniform(k, shape, jnp.float32, -a, a)

    # TODO(synk): emb_dim=32 fills only 1/4 of the 128 vreg lanes and a small
    # fraction of the MXU contraction; raising emb_dim at the model level (not
    # zero-padding) is the only way to recover that utilization.
    params = dict(
        atom_emb=xavier(ks[0], (NUM_ATOM_TYPE, emb_dim)),
        chir_emb=xavier(ks[1], (NUM_CHIRALITY_TAG, emb_dim)),
        E1=xavier(ks[2], (num_layer, NUM_BOND_TYPE, emb_dim)),
        E2=xavier(ks[3], (num_layer, NUM_BOND_DIRECTION, emb_dim)),
        W1=xavier(ks[4], (num_layer, emb_dim, 2 * emb_dim)),
        b1=jnp.zeros((num_layer, 1, 2 * emb_dim), jnp.float32),
        W2=xavier(ks[5], (num_layer, 2 * emb_dim, emb_dim)),
        b2=jnp.zeros((num_layer, 1, emb_dim), jnp.float32),
        gamma=jnp.ones((num_layer, 1, emb_dim), jnp.float32),
        beta=jnp.zeros((num_layer, 1, emb_dim), jnp.float32),
        Wfc=xavier(ks[6], (emb_dim, 2)),
        bfc=jnp.zeros((1, 2), jnp.float32),
    )
    return params


def _padded_vmem_bytes(arr):
    """(sublane, lane)-padded VMEM footprint of one array."""
    itemsize = arr.dtype.itemsize
    sub = {4: 8, 2: 16, 1: 32}.get(itemsize, 8)
    shape = arr.shape
    if len(shape) == 0:
        return sub * 128 * itemsize
    if len(shape) == 1:
        return (-(-shape[0] // 128) * 128) * sub * itemsize
    lead = 1
    for d in shape[:-2]:
        lead *= int(d)
    rows = -(-int(shape[-2]) // sub) * sub
    cols = -(-int(shape[-1]) // 128) * 128
    return lead * rows * cols * itemsize


def _vmem_limit_bytes(inputs, out_shape, n, emb_dim, num_layer):
    """Generation- and padding-aware scoped-VMEM request."""
    try:
        cap = int(getattr(pltpu.get_tpu_info(), "vmem_capacity_bytes", 128 << 20))
    except Exception:  # pragma: no cover - conservative fallback
        cap = 128 << 20
    padded_in = sum(_padded_vmem_bytes(v) for v in inputs)
    padded_out = _padded_vmem_bytes(out_shape)
    # live f32 intermediates per layer: agg/h2/d/h (N,emb) + h1 (N,2emb) + slack
    rows = -(-n // 8) * 8
    cols2 = max(128, -(-2 * emb_dim // 128) * 128)
    intermediates = 6 * rows * cols2 * 4 + (2 << 20)
    needed = padded_in + padded_out + intermediates
    # leave headroom below physical (matters on v7x where physical VMEM = 64 MiB)
    return int(max(min(needed, cap - (8 << 20)), 8 << 20))


def advmask_forward(x, edge_index, edge_attr, params, gumbel_key):
    """x: (N,2) int32 node feats; edge_index: (2,E) int32; edge_attr: (E,2) int32.

    Multiple molecules may be batched PyG-style by concatenating nodes/edges
    (block-diagonal adjacency); BatchNorm statistics then span the whole batch,
    matching PyTorch's batched behavior.  Batching many molecules per call is
    the single biggest lever at the tiny per-molecule sizes (N~16, emb=32).
    """
    N = x.shape[0]
    emb_dim = params["W1"].shape[1]
    num_layer = params["W1"].shape[0]

    # add self loops (bond_type=4, direction=0), as in GINConv.forward
    loop = jnp.arange(N, dtype=edge_index.dtype)
    src = jnp.concatenate([edge_index[0], loop])
    dst = jnp.concatenate([edge_index[1], loop])
    self_attr = jnp.stack([jnp.full((N,), 4, edge_attr.dtype),
                           jnp.zeros((N,), edge_attr.dtype)], axis=1)
    attr = jnp.concatenate([edge_attr, self_attr], axis=0)

    # dense (dst, src) adjacency; bf16 is exact for multiplicities <= 256,
    # which molecular graphs easily satisfy.
    A = jnp.zeros((N, N), jnp.float32).at[dst, src].add(1.0).astype(jnp.bfloat16)

    # per-destination edge-attribute counts folded with the edge-embedding
    # tables into a per-layer additive bias (keeps the K=6/K=3 matmuls in XLA
    # glue instead of the kernel).
    c1 = jnp.zeros((N, NUM_BOND_TYPE), jnp.float32).at[dst, attr[:, 0]].add(1.0)
    c2 = jnp.zeros((N, NUM_BOND_DIRECTION), jnp.float32).at[dst, attr[:, 1]].add(1.0)
    edge_bias = (jnp.einsum('nb,lbe->lne', c1, params["E1"])
                 + jnp.einsum('nd,lde->lne', c2, params["E2"])
                 ).astype(jnp.bfloat16)

    # initial node embeddings (bf16: matmul operand only)
    h0 = (params["atom_emb"][x[:, 0]] + params["chir_emb"][x[:, 1]]
          ).astype(jnp.bfloat16)

    # gumbel noise; only the logit DIFFERENCE matters for the hard 2-way head,
    # so fold bias and noise differences into a single per-node scalar.
    u = jax.random.uniform(gumbel_key, (N, 2), jnp.float32, 1e-6, 1.0 - 1e-6)
    g = -jnp.log(-jnp.log(u))
    w_diff = (params["Wfc"][:, 0] - params["Wfc"][:, 1])[:, None]           # (emb, 1)
    s_bias = (params["bfc"][0, 0] - params["bfc"][0, 1]
              + g[:, 0] - g[:, 1])[:, None]                                 # (N, 1)

    inputs = (h0, A, edge_bias,
              params["W1"].astype(jnp.bfloat16), params["b1"],
              params["W2"].astype(jnp.bfloat16), params["b2"],
              params["gamma"], params["beta"],
              w_diff, s_bias)

    out_shape = jax.ShapeDtypeStruct((N, OUT_LANES), jnp.bfloat16)
    vmem_limit = _vmem_limit_bytes(inputs, out_shape, N, emb_dim, num_layer)

    vmem_spec = pl.BlockSpec(memory_space=pltpu.MemorySpace.VMEM)
    z_pad = pl.pallas_call(
        advmask_kernel,
        out_shape=out_shape,
        in_specs=[vmem_spec] * len(inputs),
        out_specs=vmem_spec,
        compiler_params=pltpu.CompilerParams(vmem_limit_bytes=vmem_limit),
    )(*inputs)
    return z_pad[:, :2].astype(jnp.float32)


if __name__ == "__main__":
    key = jax.random.PRNGKey(0)
    k_param, k_x, k_chir, k_src, k_dst, k_bt, k_bd, k_gumbel = jax.random.split(key, 8)

    num_layer, emb_dim = 2, 32
    N, E = 16, 24

    params = init_params(k_param, num_layer, emb_dim)

    # synthetic molecular graph batch
    x = jnp.stack([jax.random.randint(k_x, (N,), 0, NUM_ATOM_TYPE),
                   jax.random.randint(k_chir, (N,), 0, NUM_CHIRALITY_TAG)],
                  axis=1).astype(jnp.int32)
    edge_index = jnp.stack([jax.random.randint(k_src, (E,), 0, N),
                            jax.random.randint(k_dst, (E,), 0, N)],
                           axis=0).astype(jnp.int32)
    edge_attr = jnp.stack([jax.random.randint(k_bt, (E,), 0, 4),   # bond types 0..3
                           jax.random.randint(k_bd, (E,), 0, NUM_BOND_DIRECTION)],
                          axis=1).astype(jnp.int32)

    z = advmask_forward(x, edge_index, edge_attr, params, k_gumbel)
    z = jax.block_until_ready(z)
    assert z.shape == (N, 2)
    assert bool(jnp.all(jnp.sum(z, axis=1) == 1.0))  # hard one-hot rows
    print("KERNEL_OK")
</pallas_src>

<mosaic_0001>
module attributes {stable_mosaic.version = 11 : i64} {
  func.func @advmask_kernel(%arg0: memref<16x32xbf16, #tpu.memory_space<vmem>>, %arg1: memref<16x16xbf16, #tpu.memory_space<vmem>>, %arg2: memref<2x16x32xbf16, #tpu.memory_space<vmem>>, %arg3: memref<2x32x64xbf16, #tpu.memory_space<vmem>>, %arg4: memref<2x1x64xf32, #tpu.memory_space<vmem>>, %arg5: memref<2x64x32xbf16, #tpu.memory_space<vmem>>, %arg6: memref<2x1x32xf32, #tpu.memory_space<vmem>>, %arg7: memref<2x1x32xf32, #tpu.memory_space<vmem>>, %arg8: memref<2x1x32xf32, #tpu.memory_space<vmem>>, %arg9: memref<32x1xf32, #tpu.memory_space<vmem>>, %arg10: memref<16x1xf32, #tpu.memory_space<vmem>>, %arg11: memref<16x128xbf16, #tpu.memory_space<vmem>>) attributes {dimension_semantics = [], scalar_prefetch = 0 : i64, scratch_operands = 0 : i64, tpu.core_type = #tpu.core_type<tc>} {
    %c0 = arith.constant 0 : index
    %c0_0 = arith.constant 0 : index
    %0 = vector.load %arg1[%c0, %c0_0] : memref<16x16xbf16, #tpu.memory_space<vmem>>, vector<16x16xbf16>
    %c0_1 = arith.constant 0 : index
    %c0_2 = arith.constant 0 : index
    %1 = vector.load %arg0[%c0_1, %c0_2] : memref<16x32xbf16, #tpu.memory_space<vmem>>, vector<16x32xbf16>
    %cst = arith.constant 1.000000e+00 : f32
    %2 = vector.broadcast %cst : f32 to vector<1x16xf32>
    %cst_3 = arith.constant dense<0.000000e+00> : vector<16x32xf32>
    %3 = tpu.matmul %0, %1, %cst_3 {dimension_numbers = #tpu.dot_dimension_numbers<[1], [0], [0], [1], [0, 0, 1, 1], [], []>} : vector<16x16xbf16>, vector<16x32xbf16>, vector<16x32xf32> -> vector<16x32xf32>
    %c0_4 = arith.constant 0 : index
    %c0_5 = arith.constant 0 : index
    %c0_6 = arith.constant 0 : index
    %4 = vector.load %arg2[%c0_4, %c0_5, %c0_6] : memref<2x16x32xbf16, #tpu.memory_space<vmem>>, vector<1x16x32xbf16>
    %5 = vector.shape_cast %4 : vector<1x16x32xbf16> to vector<16x32xbf16>
    %6 = arith.extf %5 : vector<16x32xbf16> to vector<16x32xf32>
    %7 = arith.addf %3, %6 : vector<16x32xf32>
    %8 = arith.truncf %7 : vector<16x32xf32> to vector<16x32xbf16>
    %c0_7 = arith.constant 0 : index
    %c0_8 = arith.constant 0 : index
    %c0_9 = arith.constant 0 : index
    %9 = vector.load %arg3[%c0_7, %c0_8, %c0_9] : memref<2x32x64xbf16, #tpu.memory_space<vmem>>, vector<1x32x64xbf16>
    %10 = vector.shape_cast %9 : vector<1x32x64xbf16> to vector<32x64xbf16>
    %cst_10 = arith.constant dense<0.000000e+00> : vector<16x64xf32>
    %11 = tpu.matmul %8, %10, %cst_10 {dimension_numbers = #tpu.dot_dimension_numbers<[1], [0], [0], [1], [0, 0, 1, 1], [], []>} : vector<16x32xbf16>, vector<32x64xbf16>, vector<16x64xf32> -> vector<16x64xf32>
    %c0_11 = arith.constant 0 : index
    %c0_12 = arith.constant 0 : index
    %c0_13 = arith.constant 0 : index
    %12 = vector.load %arg4[%c0_11, %c0_12, %c0_13] : memref<2x1x64xf32, #tpu.memory_space<vmem>>, vector<1x1x64xf32>
    %13 = vector.shape_cast %12 : vector<1x1x64xf32> to vector<1x64xf32>
    %14 = vector.broadcast %13 : vector<1x64xf32> to vector<16x64xf32>
    %15 = arith.addf %11, %14 : vector<16x64xf32>
    %cst_14 = arith.constant 0.000000e+00 : f32
    %16 = vector.broadcast %cst_14 : f32 to vector<16x64xf32>
    %17 = arith.maximumf %15, %16 : vector<16x64xf32>
    %18 = arith.truncf %17 : vector<16x64xf32> to vector<16x64xbf16>
    %c0_15 = arith.constant 0 : index
    %c0_16 = arith.constant 0 : index
    %c0_17 = arith.constant 0 : index
    %19 = vector.load %arg5[%c0_15, %c0_16, %c0_17] : memref<2x64x32xbf16, #tpu.memory_space<vmem>>, vector<1x64x32xbf16>
    %20 = vector.shape_cast %19 : vector<1x64x32xbf16> to vector<64x32xbf16>
    %cst_18 = arith.constant dense<0.000000e+00> : vector<16x32xf32>
    %21 = tpu.matmul %18, %20, %cst_18 {dimension_numbers = #tpu.dot_dimension_numbers<[1], [0], [0], [1], [0, 0, 1, 1], [], []>} : vector<16x64xbf16>, vector<64x32xbf16>, vector<16x32xf32> -> vector<16x32xf32>
    %c0_19 = arith.constant 0 : index
    %c0_20 = arith.constant 0 : index
    %c0_21 = arith.constant 0 : index
    %22 = vector.load %arg6[%c0_19, %c0_20, %c0_21] : memref<2x1x32xf32, #tpu.memory_space<vmem>>, vector<1x1x32xf32>
    %23 = vector.shape_cast %22 : vector<1x1x32xf32> to vector<1x32xf32>
    %24 = vector.broadcast %23 : vector<1x32xf32> to vector<16x32xf32>
    %25 = arith.addf %21, %24 : vector<16x32xf32>
    %cst_22 = arith.constant dense<0.000000e+00> : vector<1x32xf32>
    %26 = tpu.matmul %2, %25, %cst_22 {dimension_numbers = #tpu.dot_dimension_numbers<[1], [0], [0], [1], [0, 0, 1, 1], [], []>} : vector<1x16xf32>, vector<16x32xf32>, vector<1x32xf32> -> vector<1x32xf32>
    %cst_23 = arith.constant 6.250000e-02 : f32
    %27 = vector.broadcast %cst_23 : f32 to vector<1x32xf32>
    %28 = arith.mulf %26, %27 : vector<1x32xf32>
    %29 = vector.broadcast %28 : vector<1x32xf32> to vector<16x32xf32>
    %30 = arith.subf %25, %29 : vector<16x32xf32>
    %31 = arith.mulf %30, %30 : vector<16x32xf32>
    %cst_24 = arith.constant dense<0.000000e+00> : vector<1x32xf32>
    %32 = tpu.matmul %2, %31, %cst_24 {dimension_numbers = #tpu.dot_dimension_numbers<[1], [0], [0], [1], [0, 0, 1, 1], [], []>} : vector<1x16xf32>, vector<16x32xf32>, vector<1x32xf32> -> vector<1x32xf32>
    %cst_25 = arith.constant 6.250000e-02 : f32
    %33 = vector.broadcast %cst_25 : f32 to vector<1x32xf32>
    %34 = arith.mulf %32, %33 : vector<1x32xf32>
    %cst_26 = arith.constant 9.99999974E-6 : f32
    %35 = vector.broadcast %cst_26 : f32 to vector<1x32xf32>
    %36 = arith.addf %34, %35 : vector<1x32xf32>
    %37 = math.rsqrt %36 : vector<1x32xf32>
    %38 = vector.broadcast %37 : vector<1x32xf32> to vector<16x32xf32>
    %39 = arith.mulf %30, %38 : vector<16x32xf32>
    %c0_27 = arith.constant 0 : index
    %c0_28 = arith.constant 0 : index
    %c0_29 = arith.constant 0 : index
    %40 = vector.load %arg7[%c0_27, %c0_28, %c0_29] : memref<2x1x32xf32, #tpu.memory_space<vmem>>, vector<1x1x32xf32>
    %41 = vector.shape_cast %40 : vector<1x1x32xf32> to vector<1x32xf32>
    %42 = vector.broadcast %41 : vector<1x32xf32> to vector<16x32xf32>
    %43 = arith.mulf %39, %42 : vector<16x32xf32>
    %c0_30 = arith.constant 0 : index
    %c0_31 = arith.constant 0 : index
    %c0_32 = arith.constant 0 : index
    %44 = vector.load %arg8[%c0_30, %c0_31, %c0_32] : memref<2x1x32xf32, #tpu.memory_space<vmem>>, vector<1x1x32xf32>
    %45 = vector.shape_cast %44 : vector<1x1x32xf32> to vector<1x32xf32>
    %46 = vector.broadcast %45 : vector<1x32xf32> to vector<16x32xf32>
    %47 = arith.addf %43, %46 : vector<16x32xf32>
    %cst_33 = arith.constant 0.000000e+00 : f32
    %48 = vector.broadcast %cst_33 : f32 to vector<16x32xf32>
    %49 = arith.maximumf %47, %48 : vector<16x32xf32>
    %50 = arith.truncf %49 : vector<16x32xf32> to vector<16x32xbf16>
    %cst_34 = arith.constant dense<0.000000e+00> : vector<16x32xf32>
    %51 = tpu.matmul %0, %50, %cst_34 {dimension_numbers = #tpu.dot_dimension_numbers<[1], [0], [0], [1], [0, 0, 1, 1], [], []>} : vector<16x16xbf16>, vector<16x32xbf16>, vector<16x32xf32> -> vector<16x32xf32>
    %c1 = arith.constant 1 : index
    %c0_35 = arith.constant 0 : index
    %c0_36 = arith.constant 0 : index
    %52 = vector.load %arg2[%c1, %c0_35, %c0_36] : memref<2x16x32xbf16, #tpu.memory_space<vmem>>, vector<1x16x32xbf16>
    %53 = vector.shape_cast %52 : vector<1x16x32xbf16> to vector<16x32xbf16>
    %54 = arith.extf %53 : vector<16x32xbf16> to vector<16x32xf32>
    %55 = arith.addf %51, %54 : vector<16x32xf32>
    %56 = arith.truncf %55 : vector<16x32xf32> to vector<16x32xbf16>
    %c1_37 = arith.constant 1 : index
    %c0_38 = arith.constant 0 : index
    %c0_39 = arith.constant 0 : index
    %57 = vector.load %arg3[%c1_37, %c0_38, %c0_39] : memref<2x32x64xbf16, #tpu.memory_space<vmem>>, vector<1x32x64xbf16>
    %58 = vector.shape_cast %57 : vector<1x32x64xbf16> to vector<32x64xbf16>
    %cst_40 = arith.constant dense<0.000000e+00> : vector<16x64xf32>
    %59 = tpu.matmul %56, %58, %cst_40 {dimension_numbers = #tpu.dot_dimension_numbers<[1], [0], [0], [1], [0, 0, 1, 1], [], []>} : vector<16x32xbf16>, vector<32x64xbf16>, vector<16x64xf32> -> vector<16x64xf32>
    %c1_41 = arith.constant 1 : index
    %c0_42 = arith.constant 0 : index
    %c0_43 = arith.constant 0 : index
    %60 = vector.load %arg4[%c1_41, %c0_42, %c0_43] : memref<2x1x64xf32, #tpu.memory_space<vmem>>, vector<1x1x64xf32>
    %61 = vector.shape_cast %60 : vector<1x1x64xf32> to vector<1x64xf32>
    %62 = vector.broadcast %61 : vector<1x64xf32> to vector<16x64xf32>
    %63 = arith.addf %59, %62 : vector<16x64xf32>
    %cst_44 = arith.constant 0.000000e+00 : f32
    %64 = vector.broadcast %cst_44 : f32 to vector<16x64xf32>
    %65 = arith.maximumf %63, %64 : vector<16x64xf32>
    %66 = arith.truncf %65 : vector<16x64xf32> to vector<16x64xbf16>
    %c1_45 = arith.constant 1 : index
    %c0_46 = arith.constant 0 : index
    %c0_47 = arith.constant 0 : index
    %67 = vector.load %arg5[%c1_45, %c0_46, %c0_47] : memref<2x64x32xbf16, #tpu.memory_space<vmem>>, vector<1x64x32xbf16>
    %68 = vector.shape_cast %67 : vector<1x64x32xbf16> to vector<64x32xbf16>
    %cst_48 = arith.constant dense<0.000000e+00> : vector<16x32xf32>
    %69 = tpu.matmul %66, %68, %cst_48 {dimension_numbers = #tpu.dot_dimension_numbers<[1], [0], [0], [1], [0, 0, 1, 1], [], []>} : vector<16x64xbf16>, vector<64x32xbf16>, vector<16x32xf32> -> vector<16x32xf32>
    %c1_49 = arith.constant 1 : index
    %c0_50 = arith.constant 0 : index
    %c0_51 = arith.constant 0 : index
    %70 = vector.load %arg6[%c1_49, %c0_50, %c0_51] : memref<2x1x32xf32, #tpu.memory_space<vmem>>, vector<1x1x32xf32>
    %71 = vector.shape_cast %70 : vector<1x1x32xf32> to vector<1x32xf32>
    %72 = vector.broadcast %71 : vector<1x32xf32> to vector<16x32xf32>
    %73 = arith.addf %69, %72 : vector<16x32xf32>
    %cst_52 = arith.constant dense<0.000000e+00> : vector<1x32xf32>
    %74 = tpu.matmul %2, %73, %cst_52 {dimension_numbers = #tpu.dot_dimension_numbers<[1], [0], [0], [1], [0, 0, 1, 1], [], []>} : vector<1x16xf32>, vector<16x32xf32>, vector<1x32xf32> -> vector<1x32xf32>
    %cst_53 = arith.constant 6.250000e-02 : f32
    %75 = vector.broadcast %cst_53 : f32 to vector<1x32xf32>
    %76 = arith.mulf %74, %75 : vector<1x32xf32>
    %77 = vector.broadcast %76 : vector<1x32xf32> to vector<16x32xf32>
    %78 = arith.subf %73, %77 : vector<16x32xf32>
    %79 = arith.mulf %78, %78 : vector<16x32xf32>
    %cst_54 = arith.constant dense<0.000000e+00> : vector<1x32xf32>
    %80 = tpu.matmul %2, %79, %cst_54 {dimension_numbers = #tpu.dot_dimension_numbers<[1], [0], [0], [1], [0, 0, 1, 1], [], []>} : vector<1x16xf32>, vector<16x32xf32>, vector<1x32xf32> -> vector<1x32xf32>
    %cst_55 = arith.constant 6.250000e-02 : f32
    %81 = vector.broadcast %cst_55 : f32 to vector<1x32xf32>
    %82 = arith.mulf %80, %81 : vector<1x32xf32>
    %cst_56 = arith.constant 9.99999974E-6 : f32
    %83 = vector.broadcast %cst_56 : f32 to vector<1x32xf32>
    %84 = arith.addf %82, %83 : vector<1x32xf32>
    %85 = math.rsqrt %84 : vector<1x32xf32>
    %86 = vector.broadcast %85 : vector<1x32xf32> to vector<16x32xf32>
    %87 = arith.mulf %78, %86 : vector<16x32xf32>
    %c1_57 = arith.constant 1 : index
    %c0_58 = arith.constant 0 : index
    %c0_59 = arith.constant 0 : index
    %88 = vector.load %arg7[%c1_57, %c0_58, %c0_59] : memref<2x1x32xf32, #tpu.memory_space<vmem>>, vector<1x1x32xf32>
    %89 = vector.shape_cast %88 : vector<1x1x32xf32> to vector<1x32xf32>
    %90 = vector.broadcast %89 : vector<1x32xf32> to vector<16x32xf32>
    %91 = arith.mulf %87, %90 : vector<16x32xf32>
    %c1_60 = arith.constant 1 : index
    %c0_61 = arith.constant 0 : index
    %c0_62 = arith.constant 0 : index
    %92 = vector.load %arg8[%c1_60, %c0_61, %c0_62] : memref<2x1x32xf32, #tpu.memory_space<vmem>>, vector<1x1x32xf32>
    %93 = vector.shape_cast %92 : vector<1x1x32xf32> to vector<1x32xf32>
    %94 = vector.broadcast %93 : vector<1x32xf32> to vector<16x32xf32>
    %95 = arith.addf %91, %94 : vector<16x32xf32>
    %c0_63 = arith.constant 0 : index
    %c0_64 = arith.constant 0 : index
    %96 = vector.load %arg9[%c0_63, %c0_64] : memref<32x1xf32, #tpu.memory_space<vmem>>, vector<32x1xf32>
    %cst_65 = arith.constant dense<0.000000e+00> : vector<16x1xf32>
    %97 = tpu.matmul %95, %96, %cst_65 {dimension_numbers = #tpu.dot_dimension_numbers<[1], [0], [0], [1], [0, 0, 1, 1], [], []>} : vector<16x32xf32>, vector<32x1xf32>, vector<16x1xf32> -> vector<16x1xf32>
    %c0_66 = arith.constant 0 : index
    %c0_67 = arith.constant 0 : index
    %98 = vector.load %arg10[%c0_66, %c0_67] : memref<16x1xf32, #tpu.memory_space<vmem>>, vector<16x1xf32>
    %99 = arith.addf %97, %98 : vector<16x1xf32>
    %cst_68 = arith.constant 0.000000e+00 : f32
    %100 = vector.broadcast %cst_68 : f32 to vector<16x1xf32>
    %101 = arith.cmpf oge, %99, %100 : vector<16x1xf32>
    %102 = arith.extui %101 : vector<16x1xi1> to vector<16x1xi32>
    %103 = arith.sitofp %102 : vector<16x1xi32> to vector<16x1xf32>
    %104 = tpu.iota {dimensions = array<i32: 1>} : vector<16x128xi32>
    %c0_i32 = arith.constant 0 : i32
    %105 = vector.broadcast %c0_i32 : i32 to vector<16x128xi32>
    %106 = arith.cmpi eq, %104, %105 : vector<16x128xi32>
    %c1_i32 = arith.constant 1 : i32
    %107 = vector.broadcast %c1_i32 : i32 to vector<16x128xi32>
    %108 = arith.cmpi eq, %104, %107 : vector<16x128xi32>
    %cst_69 = arith.constant 1.000000e+00 : f32
    %109 = vector.broadcast %cst_69 : f32 to vector<16x1xf32>
    %110 = arith.subf %109, %103 : vector<16x1xf32>
    %cst_70 = arith.constant 0.000000e+00 : f32
    %111 = vector.shape_cast %110 : vector<16x1xf32> to vector<16x1xf32>
    %112 = vector.broadcast %111 : vector<16x1xf32> to vector<16x128xf32>
    %113 = vector.broadcast %cst_70 : f32 to vector<16x128xf32>
    %114 = arith.select %108, %112, %113 : vector<16x128xi1>, vector<16x128xf32>
    %115 = vector.shape_cast %103 : vector<16x1xf32> to vector<16x1xf32>
    %116 = vector.broadcast %115 : vector<16x1xf32> to vector<16x128xf32>
    %117 = arith.select %106, %116, %114 : vector<16x128xi1>, vector<16x128xf32>
    %118 = arith.truncf %117 : vector<16x128xf32> to vector<16x128xbf16>
    %c0_71 = arith.constant 0 : index
    %c0_72 = arith.constant 0 : index
    %119 = vector.load %arg11[%c0_71, %c0_72] : memref<16x128xbf16, #tpu.memory_space<vmem>>, vector<16x128xbf16>
    tpu.vector_store %arg11[%c0_71, %c0_72], %118 {strides = array<i32>} : memref<16x128xbf16, #tpu.memory_space<vmem>>, vector<16x128xbf16>,
    return
  }
}

</mosaic_0001>

<bundles_post_ra>
// kernel: tpu_custom_call.1
= control target key start
LH: loop header
LB: loop body
LE: loop exit
PB: predicated region body
PF: predicated region fallthrough
CT: control target
= control target key end

     0   :  { %v1232_v1 = vmov 0.0   ;;  %vm1233_vm0 = vmmov 0   ;;  %vm59_vm1 = vcmask 130048   ;;  %s1464_s0 = inlined_call_operand.vmem [shape: bf16[16,32], index: 0, kind: input, shape index: {}]   ;;  %s1465_s1 = inlined_call_operand.vmem [shape: bf16[16,16], index: 1, kind: input, shape index: {}]   ;;  %s1466_s2 = inlined_call_operand.vmem [shape: bf16[2,16,32], index: 2, kind: input, shape index: {}]   ;;  %s1467_s3 = inlined_call_operand.vmem [shape: bf16[2,32,64], index: 3, kind: input, shape index: {}]   ;;  %s1468_s4 = inlined_call_operand.vmem [shape: f32[2,1,64], index: 4, kind: input, shape index: {}]   ;;  %s1469_s5 = inlined_call_operand.vmem [shape: bf16[2,64,32], index: 5, kind: input, shape index: {}]   ;;  %s1470_s6 = inlined_call_operand.vmem [shape: f32[2,1,32], index: 6, kind: input, shape index: {}]   ;;  %s1471_s7 = inlined_call_operand.vmem [shape: f32[2,1,32], index: 7, kind: input, shape index: {}]   ;;  %s1472_s8 = inlined_call_operand.vmem [shape: f32[2,1,32], index: 8, kind: input, shape index: {}]   ;;  %s1473_s9 = inlined_call_operand.vmem [shape: f32[32,1], index: 9, kind: input, shape index: {}]   ;;  %s1474_s10 = inlined_call_operand.vmem [shape: f32[16,1], index: 10, kind: input, shape index: {}]   ;;  %s1475_s11 = inlined_call_operand.hbm [shape: bf16[16,128], index: 11, kind: output, shape index: {}]  }
   0x1   :  { %v1192_v0 = vld [vmem:[%s1464_s0] sm:$0xff]   ;;  %1083 = vmatprep.subr.bf16.mxu0 %v1232_v1  ;;  %1089 = vmatprep.subr.bf16.mxu1 %v1232_v1 }
   0x2   :  { %v1306_v2 = vld [vmem:[%s1465_s1] sm:$0xff]   ;;  %1084 = vmatpush3.bf16.msra.mxu0 %v1192_v0  ;;  %1085 = vmatprep.mubr.msk.bf16.mxu0 %vm1233_vm0, %v1232_v1 }
   0x3   :  { %1093 = vmatprep.mubr.msk.bf16.mxu1 %vm1233_vm0, %v1232_v1  ;;  %1097 = vmatprep.subr.bf16.mxu0 %v1232_v1 }
   0x5   :  { %1086 = vmatmul.mubr.msk.bf16.vlgmr.msra.gmra.mxu0 %vm59_vm1, %v1306_v2 }
   0x6   :  { %1105 = vmatprep.mubr.msk.bf16.mxu0 %vm1233_vm0, %v1232_v1 }
   0x7   :  { %16 = vsyncpa [#allocation3], 0  ;;  %v1194_v3 = vld [vmem:[%s1467_s3 + $0x8] sm:$0xff]   ;;  %v1195_v4 = vld [vmem:[%s1467_s3] sm:$0xff]   ;;  %vm128_vm2 = vcmask 261120   ;;  %vm215_vm3 = vcmask 523264   ;;  %v334_v37 = vlaneseq }
   0x8   :  { %1090 = vmatpush3.bf16.msra.mxu1 %v1194_v3  ;;  %v1196_v5 = vld [vmem:[%s1469_s5 + $0x18] sm:$0xff]   ;;  %v1032_v6 = vld [vmem:[%s1466_s2] sm:$0xff]   ;;  %v1197_v16 = vld [vmem:[%s1469_s5 + $0x10] sm:$0xff]   ;;  %v1234_v36 = vmov 1.0  }
   0x9   :  { %1091 = vmatprep.subr.bf16.mxu1 %v1232_v1  ;;  %1098 = vmatpush3.bf16.msra.mxu0 %v1196_v5  ;;  %v1033_v8 = vunpack.c.l.bf16 %v1032_v6  ;;  %v1034_v9 = vunpack.c.h.bf16 %v1032_v6  ;;  %v1198_v17 = vld [vmem:[%s1469_s5 + $0x8] sm:$0xff]   ;;  %v1199_v18 = vld [vmem:[%s1469_s5] sm:$0xff]   ;;  %v335_v38 = vshrl.u32 %v334_v37, 7  ;;  %v1200_v3 = vld [vmem:[%s1467_s3 + $0x18] sm:$0xff]  }
   0xa   :  { %1099 = vmatprep.subr.bf16.mxu0 %v1232_v1  ;;  %v976_v19 = vld [vmem:[%s1468_s4] ss:$0 sm:$0xff]  ;;  %v1044_v5 = vld [vmem:[%s1466_s2 + $0x8] sm:$0xff]  }
   0xb   :  { %v980_v31 = vld [vmem:[%s1470_s6] ss:$0 sm:$0xff]  ;;  %v1364_v39 = vsub.s32 0, %v335_v38 }
   0xc   :  { %1092 = vmatpush3.bf16.msra.mxu1 %v1195_v4  ;;  %v988_v54 = vld [vmem:[%s1471_s7] ss:$0 sm:$0xff]  ;;  %v1201_v4 = vld [vmem:[%s1467_s3 + $0x10] sm:$0xff]  }
   0xd   :  { %1109 = vmatprep.subr.mxu1 %v1232_v1  ;;  %1100 = vmatpush3.bf16.msra.mxu0 %v1197_v16  ;;  %v989_v57 = vld [vmem:[%s1472_s8] ss:$0 sm:$0xff]  ;;  %v1204_v16 = vld [vmem:[%s1469_s5 + $0x28] sm:$0xff]  }
   0xe   :  { %1101 = vmatprep.subr.bf16.mxu0 %v1232_v1 }
  0x11   :  { %1102 = vmatpush3.bf16.msra.mxu0 %v1198_v17  ;;  %v1205_v17 = vld [vmem:[%s1469_s5 + $0x20] sm:$0xff]  }
  0x12   :  { %1103 = vmatprep.subr.bf16.mxu0 %v1232_v1 }
  0x15   :  { %1104 = vmatpush3.bf16.msra.mxu0 %v1199_v18  ;;  %v998_v18 = vld [vmem:[%s1468_s4 + $0x1] ss:$0 sm:$0xff] }
  0x16   :  { %1129 = vmatprep.subr.bf16.mxu0 %v1232_v1 }
  0xc5   :  { %v97_v7 = vpop.f32.mrf.mxu0 }
  0xc6   :  { %v98_v12 = vadd.f32 %v1033_v8, %v97_v7  ;;  %v1037_v7 = vunpack.c.l.bf16 %v1044_v5  ;;  %v1038_v8 = vunpack.c.h.bf16 %v1044_v5 }
  0xc7   :  { %v1087_v10 = vpop.f32.mrf.mxu0 }
  0xc9   :  { %v100_v11 = vpop.f32.mrf.mxu0 }
  0xca   :  { %v101_v13 = vadd.f32 %v1034_v9, %v100_v11 }
  0xcb   :  { %v1088_v14 = vpop.f32.mrf.mxu0 }
  0xcc   :  { %v104_v15 = vpack.c.bf16 %v101_v13, %v98_v12 }
  0xce   :  { %1094 = vmatmul.mubr.msk.bf16.vlgmr.msra.gmra.mxu1 %vm128_vm2, %v104_v15  ;;  %v1203_v15 = vld [vmem:[%s1469_s5 + $0x30] sm:$0xff]  }
  0xcf   :  { %1113 = vmatprep.mubr.msk.f32.mxu1 %vm1233_vm0, %v1232_v1 }
 0x18e   :  { %v166_v20 = vpop.f32.mrf.mxu1 }
 0x18f   :  { %v167_v22 = vadd.f32 %v976_v19, %v166_v20 }
 0x190   :  { %v1095_v21 = vpop.f32.mrf.mxu1 }
 0x191   :  { %v173_v26 = vmax.f32 %v167_v22, 0.0 }
 0x192   :  { %v169_v23 = vpop.f32.mrf.mxu1 }
 0x193   :  { %v170_v24 = vadd.f32 %v976_v19, %v169_v23 }
 0x194   :  { %v1096_v25 = vpop.f32.mrf.mxu1 }
 0x195   :  { %v174_v27 = vmax.f32 %v170_v24, 0.0 }
 0x197   :  { %v175_v28 = vpack.c.bf16 %v174_v27, %v173_v26 }
 0x199   :  { %1106 = vmatmul.mubr.msk.bf16.vlgmr.msra.gmra.mxu0 %vm215_vm3, %v175_v28 }
 0x19a   :  { %1133 = vmatprep.mubr.msk.bf16.mxu0 %vm1233_vm0, %v1232_v1  ;;  %1130 = vmatpush3.bf16.msra.mxu0 %v1200_v3  ;;  %v828_v3 = vld [vmem:[%s1474_s10] sm:$0xff] }
 0x19b   :  { %1131 = vmatprep.subr.bf16.mxu0 %v1232_v1 }
 0x19e   :  { %1132 = vmatpush3.bf16.msra.mxu0 %v1201_v4 }
 0x19f   :  { %1149 = vmatprep.subr.mxu0 %v1232_v1 }
 0x259   :  { %v253_v29 = vpop.f32.mrf.mxu0 }
 0x25a   :  { %v254_v35 = vadd.f32 %v980_v31, %v253_v29 }
 0x25b   :  { %v1107_v30 = vpop.f32.mrf.mxu0 }
 0x25c   :  { %v1011_v30 = vld [vmem:[%s1470_s6 + $0x1] ss:$0 sm:$0xff] }
 0x25d   :  { %v256_v32 = vpop.f32.mrf.mxu0 }
 0x25e   :  { %v257_v33 = vadd.f32 %v980_v31, %v256_v32 }
 0x25f   :  { %v1108_v34 = vpop.f32.mrf.mxu0 }
 0x260   :  { %1110 = vmatpush3.msra.mxu1 %v257_v33 }
 0x261   :  { %1111 = vmatprep.subr.mxu1 %v1232_v1 }
 0x262   :  { %1112 = vmatpush3.msra.mxu1 %v254_v35 }
 0x263   :  { %1114 = vmatmul.mubr.msk.f32.vlgmr.msra.gmra.mxu1 %vm59_vm1, %v1234_v36  ;;  %1116 = vmatprep.subr.mxu1 %v1232_v1 }
 0x264   :  { %1120 = vmatprep.mubr.msk.f32.mxu1 %vm1233_vm0, %v1232_v1 }
 0x323   :  { %v329_v40 = vpop.f32.mrf.mxu1 }
 0x324   :  { %v333_v41 = vmul.f32 0.0625, %v329_v40 }
 0x325   :  { %v1115_v42 = vpop.f32.mrf.mxu1 }
 0x326   :  { %v337_v43 = vrot.slane %v333_v41, %v1364_v39 }
 0x328   :  { %v338_v44 = vsub.f32 %v254_v35, %v337_v43  ;;  %v339_v45 = vsub.f32 %v257_v33, %v337_v43 }
 0x32a   :  { %v341_v46 = vmul.f32 %v339_v45, %v339_v45  ;;  %v340_v47 = vmul.f32 %v338_v44, %v338_v44 }
 0x32c   :  { %1117 = vmatpush3.msra.mxu1 %v341_v46  ;;  %v827_v46 = vld [vmem:[%s1473_s9 + $0x18] sm:$0xff] }
 0x32d   :  { %1118 = vmatprep.subr.mxu1 %v1232_v1 }
 0x32e   :  { %1119 = vmatpush3.msra.mxu1 %v340_v47  ;;  %v826_v47 = vld [vmem:[%s1473_s9 + $0x10] sm:$0xff] }
 0x32f   :  { %1121 = vmatmul.mubr.msk.f32.vlgmr.msra.gmra.mxu1 %vm59_vm1, %v1234_v36  ;;  %1123 = vmatprep.subr.bf16.mxu1 %v1232_v1 }
 0x330   :  { %1125 = vmatprep.mubr.msk.bf16.mxu1 %vm1233_vm0, %v1232_v1 }
 0x3ef   :  { %v408_v48 = vpop.f32.mrf.mxu1 }
 0x3f0   :  { %v412_v49 = vmul.f32 0.0625, %v408_v48  ;;  %v825_v48 = vld [vmem:[%s1473_s9 + $0x8] sm:$0xff] }
 0x3f1   :  { %v1122_v50 = vpop.f32.mrf.mxu1 }
 0x3f2   :  { %v413_v51 = vadd.f32 1e-05, %v412_v49 }
 0x3f4   :  { %1206 = vrsqrt.f32 %v413_v51 }
 0x401   :  { %v1207_v52 = vpop.eup %1206 }
 0x402   :  { %v418_v53 = vrot.slane %v1207_v52, %v1364_v39 }
 0x404   :  { %v419_v55 = vmul.f32 %v418_v53, %v338_v44  ;;  %v420_v56 = vmul.f32 %v418_v53, %v339_v45 }
 0x406   :  { %v428_v58 = vmul.f32 %v988_v54, %v419_v55  ;;  %v429_v59 = vmul.f32 %v988_v54, %v420_v56  ;;  %v1020_v55 = vld [vmem:[%s1471_s7 + $0x1] ss:$0 sm:$0xff] }
 0x408   :  { %v437_v60 = vadd.f32 %v989_v57, %v428_v58  ;;  %v438_v61 = vadd.f32 %v989_v57, %v429_v59  ;;  %v1022_v58 = vld [vmem:[%s1472_s8 + $0x1] ss:$0 sm:$0xff]  ;;  %s1236_s8 = smov [#allocation2]  }
 0x40a   :  { %v439_v62 = vmax.f32 %v437_v60, 0.0  ;;  %v440_v63 = vmax.f32 %v438_v61, 0.0 }
 0x40c   :  { %v441_v0 = vpack.c.bf16 %v440_v63, %v439_v62  ;;  %v1235_v63 = vmov 0  }
 0x40d   :  { %1181 = vset.pattern.permute.xlu0 %v1235_v63 }
 0x40e   :  { %1124 = vmatpush3.bf16.msra.mxu1 %v441_v0 }
 0x40f   :  { %1137 = vmatprep.subr.bf16.mxu1 %v1232_v1 }
 0x411   :  { %1126 = vmatmul.mubr.msk.bf16.vlgmr.msra.gmra.mxu1 %vm59_vm1, %v1306_v2  ;;  %v1202_v2 = vld [vmem:[%s1469_s5 + $0x38] sm:$0xff]  }
 0x412   :  { %1145 = vmatprep.mubr.msk.bf16.mxu1 %vm1233_vm0, %v1232_v1  ;;  %1138 = vmatpush3.bf16.msra.mxu1 %v1202_v2 }
 0x413   :  { %1139 = vmatprep.subr.bf16.mxu1 %v1232_v1 }
 0x416   :  { %1140 = vmatpush3.bf16.msra.mxu1 %v1203_v15 }
 0x417   :  { %1141 = vmatprep.subr.bf16.mxu1 %v1232_v1 }
 0x41a   :  { %1142 = vmatpush3.bf16.msra.mxu1 %v1204_v16 }
 0x41b   :  { %1143 = vmatprep.subr.bf16.mxu1 %v1232_v1 }
 0x41e   :  { %1144 = vmatpush3.bf16.msra.mxu1 %v1205_v17 }
 0x4d1   :  { %v481_v6 = vpop.f32.mrf.mxu1 }
 0x4d2   :  { %v482_v11 = vadd.f32 %v1037_v7, %v481_v6 }
 0x4d3   :  { %v1127_v9 = vpop.f32.mrf.mxu1 }
 0x4d5   :  { %v484_v10 = vpop.f32.mrf.mxu1 }
 0x4d6   :  { %v485_v12 = vadd.f32 %v1038_v8, %v484_v10 }
 0x4d7   :  { %v1128_v13 = vpop.f32.mrf.mxu1 }
 0x4d8   :  { %v488_v14 = vpack.c.bf16 %v485_v12, %v482_v11  ;;  %v918_v12 = vand.u32 127, %v334_v37 }
 0x4da   :  { %1134 = vmatmul.mubr.msk.bf16.vlgmr.msra.gmra.mxu0 %vm128_vm2, %v488_v14  ;;  %vm920_vm6 = vcmp.eq.s32.totalorder %v918_v12, 1  ;;  %vm919_vm7 = vcmp.eq.s32.totalorder %v918_v12, 0 }
 0x4db   :  { %1153 = vmatprep.mubr.msk.f32.mxu0 %vm1233_vm0, %v1232_v1 }
 0x59a   :  { %v551_v19 = vpop.f32.mrf.mxu0 }
 0x59b   :  { %v552_v21 = vadd.f32 %v998_v18, %v551_v19 }
 0x59c   :  { %v1135_v20 = vpop.f32.mrf.mxu0 }
 0x59d   :  { %v558_v25 = vmax.f32 %v552_v21, 0.0 }
 0x59e   :  { %v554_v22 = vpop.f32.mrf.mxu0 }
 0x59f   :  { %v555_v23 = vadd.f32 %v998_v18, %v554_v22 }
 0x5a0   :  { %v1136_v24 = vpop.f32.mrf.mxu0 }
 0x5a1   :  { %v559_v26 = vmax.f32 %v555_v23, 0.0 }
 0x5a3   :  { %v560_v27 = vpack.c.bf16 %v559_v26, %v558_v25 }
 0x5a5   :  { %1146 = vmatmul.mubr.msk.bf16.vlgmr.msra.gmra.mxu1 %vm215_vm3, %v560_v27 }
 0x665   :  { %v639_v28 = vpop.f32.mrf.mxu1 }
 0x666   :  { %v640_v34 = vadd.f32 %v1011_v30, %v639_v28 }
 0x667   :  { %v1147_v29 = vpop.f32.mrf.mxu1 }
 0x669   :  { %v642_v31 = vpop.f32.mrf.mxu1 }
 0x66a   :  { %v643_v32 = vadd.f32 %v1011_v30, %v642_v31 }
 0x66b   :  { %v1148_v33 = vpop.f32.mrf.mxu1 }
 0x66c   :  { %1150 = vmatpush3.msra.mxu0 %v643_v32 }
 0x66d   :  { %1151 = vmatprep.subr.mxu0 %v1232_v1 }
 0x66e   :  { %1152 = vmatpush3.msra.mxu0 %v640_v34 }
 0x66f   :  { %1154 = vmatmul.mubr.msk.f32.vlgmr.msra.gmra.mxu0 %vm59_vm1, %v1234_v36  ;;  %1156 = vmatprep.subr.mxu0 %v1232_v1 }
 0x670   :  { %1160 = vmatprep.mubr.msk.f32.mxu0 %vm1233_vm0, %v1232_v1 }
 0x72f   :  { %v712_v35 = vpop.f32.mrf.mxu0 }
 0x730   :  { %v716_v38 = vmul.f32 0.0625, %v712_v35 }
 0x731   :  { %v1155_v40 = vpop.f32.mrf.mxu0 }
 0x732   :  { %v720_v41 = vrot.slane %v716_v38, %v1364_v39 }
 0x734   :  { %v721_v42 = vsub.f32 %v640_v34, %v720_v41  ;;  %v722_v43 = vsub.f32 %v643_v32, %v720_v41 }
 0x736   :  { %v724_v44 = vmul.f32 %v722_v43, %v722_v43  ;;  %v723_v45 = vmul.f32 %v721_v42, %v721_v42 }
 0x738   :  { %1157 = vmatpush3.msra.mxu0 %v724_v44 }
 0x739   :  { %1158 = vmatprep.subr.mxu0 %v1232_v1 }
 0x73a   :  { %1159 = vmatpush3.msra.mxu0 %v723_v45 }
 0x73b   :  { %1161 = vmatmul.mubr.msk.f32.vlgmr.msra.gmra.mxu0 %vm59_vm1, %v1234_v36  ;;  %1163 = vmatprep.subr.mxu0 %v827_v46  ;;  %v824_v36 = vld [vmem:[%s1473_s9] sm:$0xff] }
 0x73c   :  { %1164 = vmatpush3.msra.mxu0 %v827_v46 }
 0x73d   :  { %1165 = vmatprep.subr.mxu0 %v826_v47 }
 0x73e   :  { %1166 = vmatpush3.msra.mxu0 %v826_v47 }
 0x73f   :  { %1167 = vmatprep.subr.mxu0 %v825_v48 }
 0x740   :  { %1168 = vmatpush3.msra.mxu0 %v825_v48 }
 0x741   :  { %1169 = vmatprep.subr.mxu0 %v824_v36 }
 0x742   :  { %1170 = vmatpush3.msra.mxu0 %v824_v36 }
 0x7fb   :  { %v791_v49 = vpop.f32.mrf.mxu0 }
 0x7fc   :  { %v795_v50 = vmul.f32 0.0625, %v791_v49 }
 0x7fd   :  { %v1162_v51 = vpop.f32.mrf.mxu0 }
 0x7fe   :  { %v796_v52 = vadd.f32 1e-05, %v795_v50 }
 0x800   :  { %1208 = vrsqrt.f32 %v796_v52 }
 0x80d   :  { %v1209_v53 = vpop.eup %1208 }
 0x80e   :  { %v801_v54 = vrot.slane %v1209_v53, %v1364_v39  ;;  %v829_v39 = vld [vmem:[%s1474_s10 + $0x8] sm:$0xff]  ;;  %s962_s10 = sshll.u32 %s1236_s8, 4  ;;  %s963_s10 = int_to_ptr.vmem [resolvable:$true] %s962_s10 }
 0x80f   :  { %s1210_s26 = scalar_lea.vmem %s963_s10, 128  ;;  %p1215_p1 = scmp.lt.s32.totalorder %s963_s10, %s963_s10 }
 0x810   :  { %v802_v56 = vmul.f32 %v801_v54, %v721_v42  ;;  %v803_v57 = vmul.f32 %v801_v54, %v722_v43  ;;  %p1211_p0 = scmp.ne.s32.totalorder %s963_s10, %s1210_s26  ;;  %p1216_p2 = scmp.lt.s32.totalorder %s1210_s26, %s1210_s26 }
 0x812   :  { %v812_v59 = vmul.f32 %v1020_v55, %v802_v56  ;;  %v813_v60 = vmul.f32 %v1020_v55, %v803_v57  ;;  %p1217_p3 = por %p1216_p2, %p1215_p1 }
 0x814   :  { %v822_v61 = vadd.f32 %v1022_v58, %v812_v59  ;;  %v823_v62 = vadd.f32 %v1022_v58, %v813_v60  ;;  %p1218_p4 = pnand %p1217_p3, %p1211_p0 }
 0x816   :  { %1171 = vmatprep.mubr.msk.f32.mxu0 %vm128_vm2, %v822_v61 }
 0x817   :  { %1172 = vmatmul.mubr.msk.f32.vlgmr.msra.gmra.mxu0 %vm128_vm2, %v823_v62 }
 0x8d7   :  { %v1173_v0 = vpop.f32.mrf.mxu0 }
 0x8d8   :  { %v908_v4 = vadd.f32 %v1173_v0, %v829_v39 }
 0x8d9   :  { %v902_v2 = vpop.f32.mrf.mxu0 }
 0x8da   :  { %vm912_vm4 = vcmp.ge.f32.partialorder %v908_v4, 0.0  ;;  %v903_v5 = vadd.f32 %v902_v2, %v828_v3 }
 0x8db   :  { %v1026_v6 = vsel %vm912_vm4, 1.0, %v1232_v1 }
 0x8dc   :  { %vm911_vm5 = vcmp.ge.f32.partialorder %v903_v5, 0.0  ;;  %v922_v8 = vsub.f32 1.0, %v1026_v6 }
 0x8dd   :  { %v1025_v7 = vsel %vm911_vm5, 1.0, %v1232_v1 }
 0x8de   :  { %v921_v9 = vsub.f32 1.0, %v1025_v7  ;;  %v1187_v11 = vpack.i.bf16 %v1026_v6, %v1025_v7 }
 0x8e0   :  { %v1182_v10 = vpack.i.bf16 %v922_v8, %v921_v9 }
 0x8e2   :  { %1183 = vperm.xlu0 %1181, %v1182_v10  }
 0x8e6   :  { %1188 = vperm.xlu0 %1181, %v1187_v11  }
 0x95d   :  { %v1184_v13 = vpop.permute.xlu0 %1183 }
 0x95e   :  { %v1186_v14 = vunpack.i.h.bf16 %v1184_v13  ;;  %v1185_v15 = vunpack.i.l.bf16 %v1184_v13 }
 0x960   :  { %v934_v19 = vsel %vm920_vm6, %v1186_v14, 0.0  ;;  %v933_v1 = vsel %vm920_vm6, %v1185_v15, 0.0 }
 0x961   :  { %v1189_v16 = vpop.permute.xlu0 %1188 }
 0x962   :  { %v1191_v17 = vunpack.i.h.bf16 %v1189_v16  ;;  %v1190_v18 = vunpack.i.l.bf16 %v1189_v16 }
 0x964   :  { %v945_v20 = vsel %vm919_vm7, %v1190_v18, %v933_v1  ;;  %v946_v21 = vsel %vm919_vm7, %v1191_v17, %v934_v19 }
 0x965   :  { %v1042_v22 = vpack.c.bf16 %v946_v21, %v945_v20 }
 0x967   :  { %1043 = vst [vmem:[#allocation2] sm:$0xff] %v1042_v22  }
 0x968   :  { %1221 = shalt.err (!%p1218_p4)
}
 0x969   :  { %s1237_s27 = smov 64   ;;  %s1238_s3 = smov 4  }
 0x96a   :  { %968 = dma.vmem_to_hbm [thread:$0]  %s963_s10, 128, %s1475_s11, [#allocation3], %s1237_s27, %s1237_s27, %s1238_s3  }
 0x96b   :  { %1230 = dma.done.wait [#allocation3], 128  }
 0x96c   :  { %1231 = vsyncadd [#allocation3], 4294967168 }
 0x96d   :  { %972 = vsyncpa [#allocation3], 1 }

</bundles_post_ra>
